<compile_context>
chip_gen: v5e
topology: v5e:2x2
jax: 0.10.0
libtpu: 0.0.40
codegen_flags: <defaults>
</compile_context>

<pallas_src>
import functools
import math

import jax
import jax.numpy as jnp
from jax.experimental import pallas as pl
from jax.experimental.pallas import tpu as pltpu

LOG2 = math.log(2.0)


def _round_up(x, m):
    return (x + m - 1) // m * m


def _atomwise_kernel(x_ref, w1_ref, b1_ref, w2_ref, b2_ref, aux_ref,
                     yi_ref, y_ref, *, n_out):
    # Transposed ("molecules in lanes") layout:
    #   x_ref  : (1, F, TBm)        bf16  one atom-slice of TBm molecules
    #   w1_ref : (H, F)             bf16  W1^T
    #   b1_ref : (H, 1)             f32
    #   w2_ref : (H, 1) f32 if n_out == 1 else (n_out, H) bf16  (ScaleShift folded)
    #   b2_ref : (n_out, 1)         f32   (ScaleShift folded)
    #   aux_ref: (1, n_out+1, TBm)  f32   rows [:n_out] = atomref y0, [n_out] = mask
    #   yi_ref : (1, n_out, TBm)    f32   per-atom contributions (unmasked)
    #   y_ref  : (n_out, TBm)       f32   pooled property, accumulated over atoms
    a = pl.program_id(1)

    @pl.when(a == 0)
    def _init():
        y_ref[...] = jnp.zeros_like(y_ref)

    x = x_ref[0]                                              # (F, TBm) bf16

    # ---- layer 1 on the MXU (bf16 in, f32 accumulate) + shifted_softplus ----
    h = jnp.dot(w1_ref[...], x, preferred_element_type=jnp.float32) + b1_ref[...]
    h = jnp.logaddexp(h, 0.0) - LOG2                          # (H, TBm) f32, EUP

    # ---- layer 2 (ScaleShift already folded into w2/b2 by the wrapper) ----
    if n_out == 1:
        # Module default: keep the K=H, N=1 contraction OFF the MXU — VPU mul +
        # sublane reduce; result (1, TBm) is already lane-dense.
        o = jnp.sum(h * w2_ref[...], axis=0, keepdims=True) + b2_ref[...]
    else:
        # General n_out: bf16 LHS halves the push count of the narrow matmul.
        o = jnp.dot(w2_ref[...], h.astype(jnp.bfloat16),
                    preferred_element_type=jnp.float32) + b2_ref[...]

    aux = aux_ref[0]                                          # (n_out + 1, TBm)
    y0 = aux[:n_out, :]
    mask = aux[n_out:n_out + 1, :]

    yi = o + y0                                               # (n_out, TBm)
    yi_ref[0] = yi                                            # lane-dense store

    # ---- masked sum-pool over atoms: accumulate across the grid's atom axis ----
    y_ref[...] += yi * mask


def atomwise_forward(representation, atomic_numbers, atom_mask, params,
                     mean=0.0, stddev=1.0, target_block_bytes=2 * 1024 * 1024):
    """representation: [B, A, F] f32; atomic_numbers: [B, A] i32; atom_mask: [B, A]."""
    B, A, F = representation.shape
    w1, b1, w2, b2, atomref_table = params
    H = w1.shape[1]
    n_out = w2.shape[1]

    # ---- fold ScaleShift (stddev/mean) into the last linear layer (one-time) ----
    w2s = (w2 * stddev).astype(jnp.float32)                       # (H, n_out)
    b2s = (b2 * stddev + mean).astype(jnp.float32).reshape(n_out, 1)
    b1c = b1.astype(jnp.float32).reshape(H, 1)
    w1t = w1.T.astype(jnp.bfloat16)                               # (H, F)
    if n_out == 1:
        w2k = w2s                                                 # (H, 1) f32, VPU path
    else:
        w2k = w2s.T.astype(jnp.bfloat16)                          # (n_out, H), MXU path

    # ---- tiling: molecules on the lane axis (x128), atoms on the grid ----
    B_pad = _round_up(B, 128)
    tbm = max(128, (target_block_bytes // (F * 2)) // 128 * 128)  # ~2 MiB of x / step
    tbm = min(tbm, B_pad)
    # prefer >= 2 (even) parallel blocks so both v7x TensorCores get work
    if B_pad // tbm < 2 and B_pad >= 256 and B_pad % 256 == 0:
        tbm = min(tbm, B_pad // 2)
    num_bblocks = pl.cdiv(B_pad, tbm)
    B_pad = num_bblocks * tbm                                     # blocks tile exactly
    pad_b = B_pad - B

    # ---- JAX glue: pad, gather atomref, build lane-dense (transposed) streams ----
    rep_p = jnp.pad(representation, ((0, pad_b), (0, 0), (0, 0)))
    z_p = jnp.pad(atomic_numbers, ((0, pad_b), (0, 0)))           # padded Z=0 -> atomref row 0
    mask_p = jnp.pad(atom_mask.astype(jnp.float32), ((0, pad_b), (0, 0)))

    # Dominant stream: transpose fused with the bf16 cast (same HBM traffic as
    # the cast alone); molecules land on the lane axis.
    x_am = jnp.transpose(rep_p, (1, 2, 0)).astype(jnp.bfloat16)   # (A, F, B_pad)
    y0_am = jnp.transpose(atomref_table[z_p], (1, 2, 0))          # (A, n_out, B_pad)
    mask_t = mask_p.T                                             # (A, B_pad)
    if n_out == 1:
        aux = jnp.stack([y0_am[:, 0, :], mask_t], axis=1)         # (A, 2, B_pad)
    else:
        aux = jnp.concatenate([y0_am, mask_t[:, None, :]], axis=1)

    kernel = functools.partial(_atomwise_kernel, n_out=n_out)
    rows = A * B_pad

    cost = pl.CostEstimate(
        flops=int(2 * rows * F * H + 2 * rows * H * n_out),
        transcendentals=int(2 * rows * H),
        bytes_accessed=int(rows * F * 2 + rows * (n_out + 1) * 4
                           + rows * n_out * 4 + B_pad * n_out * 4
                           + F * H * 2 + H * 4 + H * n_out * 4 + n_out * 4),
    )

    yi_am, y_t = pl.pallas_call(
        kernel,
        out_shape=(
            jax.ShapeDtypeStruct((A, n_out, B_pad), jnp.float32),   # contributions yi
            jax.ShapeDtypeStruct((n_out, B_pad), jnp.float32),      # pooled y
        ),
        grid=(num_bblocks, A),                                      # reduction axis last
        in_specs=[
            pl.BlockSpec((1, F, tbm), lambda bb, a: (a, 0, bb)),        # x (atom slice)
            pl.BlockSpec((H, F), lambda bb, a: (0, 0)),                 # W1^T (bf16)
            pl.BlockSpec((H, 1), lambda bb, a: (0, 0)),                 # b1
            pl.BlockSpec(w2k.shape, lambda bb, a: (0, 0)),              # W2 (folded)
            pl.BlockSpec((n_out, 1), lambda bb, a: (0, 0)),             # b2 (folded)
            pl.BlockSpec((1, n_out + 1, tbm), lambda bb, a: (a, 0, bb)),  # [y0 | mask]
        ],
        out_specs=(
            pl.BlockSpec((1, n_out, tbm), lambda bb, a: (a, 0, bb)),    # yi, lane-dense
            pl.BlockSpec((n_out, tbm), lambda bb, a: (0, bb)),          # y accumulator
        ),
        compiler_params=pltpu.CompilerParams(
            dimension_semantics=("parallel", "arbitrary"),
            vmem_limit_bytes=32 * 1024 * 1024),
        cost_estimate=cost,
    )(x_am, w1t, b1c, w2k, b2s, aux)

    yi = jnp.transpose(yi_am, (2, 0, 1))[:B]                      # (B, A, n_out)
    y = y_t.T[:B]                                                 # (B, n_out)
    return y, yi


def _reference(representation, atomic_numbers, atom_mask, params, mean, stddev,
               matmul_dtype=jnp.float32):
    w1, b1, w2, b2, atomref_table = params
    h = jnp.dot(representation.astype(matmul_dtype), w1.astype(matmul_dtype),
                preferred_element_type=jnp.float32) + b1
    h = jnp.logaddexp(h, 0.0) - LOG2
    yi = h @ w2 + b2
    yi = yi * stddev + mean
    yi = yi + atomref_table[atomic_numbers]
    y = jnp.sum(yi * atom_mask.astype(jnp.float32)[..., None], axis=1)
    return y, yi


if __name__ == "__main__":
    # Module defaults: n_in=128, n_out=1, pyramidal hidden = n_in // 2.
    B, A, F, H, N_OUT, MAX_Z = 4, 6, 128, 64, 1, 100
    MEAN, STDDEV = 0.5, 2.0

    key = jax.random.PRNGKey(0)
    k_repr, k_w1, k_b1, k_w2, k_b2, k_ref, k_z = jax.random.split(key, 7)

    representation = jax.random.normal(k_repr, (B, A, F), jnp.float32)
    atomic_numbers = jax.random.randint(k_z, (B, A), 1, MAX_Z, jnp.int32)
    # mask out the last two atoms of the second molecule
    atom_mask = jnp.ones((B, A), jnp.float32).at[1, -2:].set(0.0)

    params = (
        jax.random.normal(k_w1, (F, H), jnp.float32) * 0.1,
        jax.random.normal(k_b1, (H,), jnp.float32) * 0.1,
        jax.random.normal(k_w2, (H, N_OUT), jnp.float32) * 0.1,
        jax.random.normal(k_b2, (N_OUT,), jnp.float32) * 0.1,
        jax.random.normal(k_ref, (MAX_Z, N_OUT), jnp.float32) * 0.1,  # atomref table
    )

    y, yi = atomwise_forward(representation, atomic_numbers, atom_mask,
                             params, mean=MEAN, stddev=STDDEV)
    jax.block_until_ready((y, yi))

    assert y.shape == (B, N_OUT) and yi.shape == (B, A, N_OUT)

    # Precision-matched reference (bf16 first matmul, like the kernel).
    y_bf, yi_bf = _reference(representation, atomic_numbers, atom_mask,
                             params, MEAN, STDDEV, matmul_dtype=jnp.bfloat16)
    assert jnp.allclose(y, y_bf, atol=1e-3, rtol=1e-3)
    assert jnp.allclose(yi, yi_bf, atol=1e-3, rtol=1e-3)

    # Loose sanity check against the full-f32 reference (bf16 input rounding).
    y_f32, yi_f32 = _reference(representation, atomic_numbers, atom_mask,
                               params, MEAN, STDDEV, matmul_dtype=jnp.float32)
    assert jnp.allclose(y, y_f32, atol=1e-1, rtol=1e-1)
    assert jnp.allclose(yi, yi_f32, atol=1e-1, rtol=1e-1)

    print("KERNEL_OK")
</pallas_src>

<mosaic_0001>
module attributes {stable_mosaic.version = 11 : i64} {
  func.func @_atomwise_kernel(%arg0: i32, %arg1: i32, %arg2: memref<1x128x128xbf16, #tpu.memory_space<vmem>>, %arg3: memref<64x128xbf16, #tpu.memory_space<vmem>>, %arg4: memref<64x1xf32, #tpu.memory_space<vmem>>, %arg5: memref<64x1xf32, #tpu.memory_space<vmem>>, %arg6: memref<1x1xf32, #tpu.memory_space<vmem>>, %arg7: memref<1x2x128xf32, #tpu.memory_space<vmem>>, %arg8: memref<1x1x128xf32, #tpu.memory_space<vmem>>, %arg9: memref<1x128xf32, #tpu.memory_space<vmem>>) attributes {dimension_semantics = [#tpu.dimension_semantics<parallel>, #tpu.dimension_semantics<arbitrary>], iteration_bounds = array<i64: 1, 6>, scalar_prefetch = 0 : i64, scratch_operands = 0 : i64, tpu.core_type = #tpu.core_type<tc>, window_params = [{transform_indices = @transform_0, window_bounds = array<i64: 1, 128, 128>}, {pipeline_mode = #tpu.pipeline_mode<synchronous>, transform_indices = @transform_1, window_bounds = array<i64: 64, 128>}, {pipeline_mode = #tpu.pipeline_mode<synchronous>, transform_indices = @transform_2, window_bounds = array<i64: 64, 1>}, {pipeline_mode = #tpu.pipeline_mode<synchronous>, transform_indices = @transform_3, window_bounds = array<i64: 64, 1>}, {pipeline_mode = #tpu.pipeline_mode<synchronous>, transform_indices = @transform_4, window_bounds = array<i64: 1, 1>}, {transform_indices = @transform_5, window_bounds = array<i64: 1, 2, 128>}, {transform_indices = @transform_6, window_bounds = array<i64: 1, 1, 128>}, {transform_indices = @transform_7, window_bounds = array<i64: 1, 128>}]} {
    %c0_i32 = arith.constant 0 : i32
    %0 = arith.cmpi eq, %arg1, %c0_i32 : i32
    %1 = arith.extui %0 : i1 to i32
    %c0_i32_0 = arith.constant 0 : i32
    %2 = arith.cmpi ne, %1, %c0_i32_0 : i32
    scf.if %2 {
      %cst_25 = arith.constant 0.000000e+00 : f32
      %46 = vector.broadcast %cst_25 : f32 to vector<1x128xf32>
      %c0_26 = arith.constant 0 : index
      %c0_27 = arith.constant 0 : index
      %47 = vector.load %arg9[%c0_26, %c0_27] : memref<1x128xf32, #tpu.memory_space<vmem>>, vector<1x128xf32>
      tpu.vector_store %arg9[%c0_26, %c0_27], %46 {strides = array<i32>} : memref<1x128xf32, #tpu.memory_space<vmem>>, vector<1x128xf32>,
    } else {
    }
    %c0 = arith.constant 0 : index
    %c0_1 = arith.constant 0 : index
    %c0_2 = arith.constant 0 : index
    %3 = vector.load %arg2[%c0, %c0_1, %c0_2] : memref<1x128x128xbf16, #tpu.memory_space<vmem>>, vector<1x128x128xbf16>
    %4 = vector.shape_cast %3 : vector<1x128x128xbf16> to vector<128x128xbf16>
    %c0_3 = arith.constant 0 : index
    %c0_4 = arith.constant 0 : index
    %5 = vector.load %arg3[%c0_3, %c0_4] : memref<64x128xbf16, #tpu.memory_space<vmem>>, vector<64x128xbf16>
    %cst = arith.constant dense<0.000000e+00> : vector<64x128xf32>
    %6 = tpu.matmul %5, %4, %cst {dimension_numbers = #tpu.dot_dimension_numbers<[1], [0], [0], [1], [0, 0, 1, 1], [], []>} : vector<64x128xbf16>, vector<128x128xbf16>, vector<64x128xf32> -> vector<64x128xf32>
    %c0_5 = arith.constant 0 : index
    %c0_6 = arith.constant 0 : index
    %7 = vector.load %arg4[%c0_5, %c0_6] : memref<64x1xf32, #tpu.memory_space<vmem>>, vector<64x1xf32>
    %8 = vector.broadcast %7 : vector<64x1xf32> to vector<64x128xf32>
    %9 = arith.addf %6, %8 : vector<64x128xf32>
    %cst_7 = arith.constant 0.000000e+00 : f32
    %10 = vector.broadcast %cst_7 : f32 to vector<64x128xf32>
    %11 = arith.maximumf %9, %10 : vector<64x128xf32>
    %12 = vector.broadcast %cst_7 : f32 to vector<64x128xf32>
    %13 = arith.subf %9, %12 : vector<64x128xf32>
    %14 = arith.cmpf one, %13, %13 : vector<64x128xf32>
    %15 = vector.broadcast %cst_7 : f32 to vector<64x128xf32>
    %16 = arith.addf %9, %15 : vector<64x128xf32>
    %17 = math.absf %13 : vector<64x128xf32>
    %cst_8 = arith.constant 0.000000e+00 : f32
    %18 = vector.broadcast %cst_8 : f32 to vector<64x128xf32>
    %19 = arith.subf %18, %17 : vector<64x128xf32>
    %20 = math.exp %19 : vector<64x128xf32>
    %21 = math.log1p %20 : vector<64x128xf32>
    %22 = arith.addf %11, %21 : vector<64x128xf32>
    %23 = arith.select %14, %16, %22 : vector<64x128xi1>, vector<64x128xf32>
    %cst_9 = arith.constant 0.693147182 : f32
    %24 = vector.broadcast %cst_9 : f32 to vector<64x128xf32>
    %25 = arith.subf %23, %24 : vector<64x128xf32>
    %c0_10 = arith.constant 0 : index
    %c0_11 = arith.constant 0 : index
    %26 = vector.load %arg5[%c0_10, %c0_11] : memref<64x1xf32, #tpu.memory_space<vmem>>, vector<64x1xf32>
    %27 = vector.broadcast %26 : vector<64x1xf32> to vector<64x128xf32>
    %28 = arith.mulf %25, %27 : vector<64x128xf32>
    %cst_12 = arith.constant dense<0.000000e+00> : vector<128xf32>
    %29 = vector.multi_reduction <add>, %28, %cst_12 [0] : vector<64x128xf32> to vector<128xf32>
    %30 = vector.shape_cast %29 : vector<128xf32> to vector<1x128xf32>
    %c0_13 = arith.constant 0 : index
    %c0_14 = arith.constant 0 : index
    %31 = vector.load %arg6[%c0_13, %c0_14] : memref<1x1xf32, #tpu.memory_space<vmem>>, vector<1x1xf32>
    %32 = vector.broadcast %31 : vector<1x1xf32> to vector<1x128xf32>
    %33 = arith.addf %30, %32 : vector<1x128xf32>
    %c0_15 = arith.constant 0 : index
    %c0_16 = arith.constant 0 : index
    %c0_17 = arith.constant 0 : index
    %34 = vector.load %arg7[%c0_15, %c0_16, %c0_17] : memref<1x2x128xf32, #tpu.memory_space<vmem>>, vector<1x2x128xf32>
    %35 = vector.shape_cast %34 : vector<1x2x128xf32> to vector<2x128xf32>
    %36 = vector.extract_strided_slice %35 {offsets = [0, 0], sizes = [1, 128], strides = [1, 1]} : vector<2x128xf32> to vector<1x128xf32>
    %37 = vector.extract_strided_slice %35 {offsets = [1, 0], sizes = [1, 128], strides = [1, 1]} : vector<2x128xf32> to vector<1x128xf32>
    %38 = arith.addf %33, %36 : vector<1x128xf32>
    %c0_18 = arith.constant 0 : index
    %c0_19 = arith.constant 0 : index
    %c0_20 = arith.constant 0 : index
    %39 = vector.load %arg8[%c0_18, %c0_19, %c0_20] : memref<1x1x128xf32, #tpu.memory_space<vmem>>, vector<1x1x128xf32>
    %40 = vector.shape_cast %39 : vector<1x1x128xf32> to vector<1x128xf32>
    %41 = vector.shape_cast %38 : vector<1x128xf32> to vector<1x1x128xf32>
    tpu.vector_store %arg8[%c0_18, %c0_19, %c0_20], %41 {strides = array<i32>} : memref<1x1x128xf32, #tpu.memory_space<vmem>>, vector<1x1x128xf32>,
    %c0_21 = arith.constant 0 : index
    %c0_22 = arith.constant 0 : index
    %42 = vector.load %arg9[%c0_21, %c0_22] : memref<1x128xf32, #tpu.memory_space<vmem>>, vector<1x128xf32>
    %43 = arith.mulf %38, %37 : vector<1x128xf32>
    %44 = arith.addf %42, %43 : vector<1x128xf32>
    %c0_23 = arith.constant 0 : index
    %c0_24 = arith.constant 0 : index
    %45 = vector.load %arg9[%c0_23, %c0_24] : memref<1x128xf32, #tpu.memory_space<vmem>>, vector<1x128xf32>
    tpu.vector_store %arg9[%c0_23, %c0_24], %44 {strides = array<i32>} : memref<1x128xf32, #tpu.memory_space<vmem>>, vector<1x128xf32>,
    return
  }
  func.func @transform_0(%arg0: i32, %arg1: i32) -> (i32, i32, i32) {
    %c0_i32 = arith.constant 0 : i32
    %c0_i32_0 = arith.constant 0 : i32
    return %arg1, %c0_i32, %arg0 : i32, i32, i32
  }
  func.func @transform_1(%arg0: i32, %arg1: i32) -> (i32, i32) {
    %c0_i32 = arith.constant 0 : i32
    %c0_i32_0 = arith.constant 0 : i32
    %c0_i32_1 = arith.constant 0 : i32
    return %c0_i32, %c0_i32_0 : i32, i32
  }
  func.func @transform_2(%arg0: i32, %arg1: i32) -> (i32, i32) {
    %c0_i32 = arith.constant 0 : i32
    %c0_i32_0 = arith.constant 0 : i32
    %c0_i32_1 = arith.constant 0 : i32
    return %c0_i32, %c0_i32_0 : i32, i32
  }
  func.func @transform_3(%arg0: i32, %arg1: i32) -> (i32, i32) {
    %c0_i32 = arith.constant 0 : i32
    %c0_i32_0 = arith.constant 0 : i32
    %c0_i32_1 = arith.constant 0 : i32
    return %c0_i32, %c0_i32_0 : i32, i32
  }
  func.func @transform_4(%arg0: i32, %arg1: i32) -> (i32, i32) {
    %c0_i32 = arith.constant 0 : i32
    %c0_i32_0 = arith.constant 0 : i32
    %c0_i32_1 = arith.constant 0 : i32
    return %c0_i32, %c0_i32_0 : i32, i32
  }
  func.func @transform_5(%arg0: i32, %arg1: i32) -> (i32, i32, i32) {
    %c0_i32 = arith.constant 0 : i32
    %c0_i32_0 = arith.constant 0 : i32
    return %arg1, %c0_i32, %arg0 : i32, i32, i32
  }
  func.func @transform_6(%arg0: i32, %arg1: i32) -> (i32, i32, i32) {
    %c0_i32 = arith.constant 0 : i32
    %c0_i32_0 = arith.constant 0 : i32
    return %arg1, %c0_i32, %arg0 : i32, i32, i32
  }
  func.func @transform_7(%arg0: i32, %arg1: i32) -> (i32, i32) {
    %c0_i32 = arith.constant 0 : i32
    %c0_i32_0 = arith.constant 0 : i32
    return %c0_i32, %arg0 : i32, i32
  }
}

</mosaic_0001>

<bundles_post_ra>
// kernel: tpu_custom_call.1
= control target key start
LH: loop header
LB: loop body
LE: loop exit
PB: predicated region body
PF: predicated region fallthrough
CT: control target
= control target key end

     0   :  { %s1614_s0 = inlined_call_operand.hbm [shape: bf16[6,128,128], index: 0, kind: input, shape index: {}]   ;;  %s1615_s1 = inlined_call_operand.vmem [shape: bf16[64,128], index: 1, kind: input, shape index: {}]   ;;  %s1616_s2 = inlined_call_operand.vmem [shape: f32[64,1], index: 2, kind: input, shape index: {}]   ;;  %s1617_s3 = inlined_call_operand.vmem [shape: f32[64,1], index: 3, kind: input, shape index: {}]   ;;  %s1618_s4 = inlined_call_operand.<no memory space> [shape: f32[1,1], index: 4, kind: input, shape index: {}]   ;;  %s1619_s5 = inlined_call_operand.vmem [shape: f32[6,2,128], index: 5, kind: input, shape index: {}]   ;;  %s1620_s6 = inlined_call_operand.hbm [shape: f32[6,1,128], index: 6, kind: output, shape index: {0}]   ;;  %s1621_s7 = inlined_call_operand.hbm [shape: f32[1,128], index: 7, kind: output, shape index: {1}]  }
   0x1   :  { %v13_v0 = vstv %s1618_s4 }
   0x2   :  { %14 = vst [vmem:[#allocation2] sm:$0x1] %v13_v0 }
   0x3   :  { %15 = vsyncpa [#allocation4], 0 }
   0x4   :  { %17 = vsyncpa [#allocation4 + $0x1], 0 }
   0x5   :  { %18 = vsyncpa [#allocation5], 0 }
   0x6   :  { %20 = vsyncpa [#allocation5 + $0x1], 0 }
   0x7   :  { %21 = vsyncpa [#allocation8], 0  ;;  %s1308_s26 = smov 0   ;;  %s1310_s27 = smov 0  }
   0x8   :  { %s1312_s28 = smov 0   ;;  %s1314_s29 = smov 0  }
   0x9   :  { %s1316_s30 = smov 0   ;;  %s1318_s8 = smov 0  }
   0xa LB: > { %1624 = sst [smem:[#allocation12_spill]] %s1254_s30  ;;  %s898_s4 = sadd.s32 4294967295, %s1258_s8   ;;  %s1258_s8 = sphi %s1318_s8, %s27_s8   ;;  %s1254_s30 = sphi %s1316_s30, %s1638_s30   ;;  %s1250_s29 = sphi %s1314_s29, %s1637_s29   ;;  %s1246_s28 = sphi %s1312_s28, %s1641_s28   ;;  %s1242_s27 = sphi %s1310_s27, %s1640_s27   ;;  %s1238_s26 = sphi %s1308_s26, %s1639_s26  }
   0xb   : > { %s899_s9 = sadd.s32 4294967294, %s1258_s8   ;;  %s36_s10 = sadd.s32 1, %s1254_s30 }
   0xc   : > { %s48_s11 = sadd.s32 1, %s1246_s28  ;;  %p37_p0 = scmp.ge.s32.totalorder %s36_s10, 6 }
   0xd   : > { %p55_p1 = scmp.ne.s32.totalorder %s1246_s28, %s1242_s27  ;;  %p56_p2 = scmp.eq.s32.totalorder %s1258_s8, 0 }
   0xe   : > { %p61_p3 = scmp.ne.s32.totalorder %s1242_s27, %s1238_s26  ;;  %s1643_s10 = smov (%p37_p0, %s36_s10), 0 }
   0xf   : > { %1625 = sst [smem:[#allocation13_spill]] %s1643_s10  ;;  %p1349_p4 = por %p56_p2, %p55_p1 }
  0x10   : > { %p62_p5 = scmp.eq.s32.totalorder %s898_s4, 0  ;;  %s43_s13 = ssub.s32 %s1254_s30, %s1643_s10 }
  0x11   : > { %p1355_p6 = scmp.eq.s32.totalorder %s898_s4, 5  ;;  %p46_p7 = scmp.eq.s32.totalorder %s43_s13, 0 }
  0x12   : > { %p1359_p8 = por %p62_p5, %p61_p3  ;;  %p205_p10 = scmp.eq.s32.totalorder %s899_s9, 5 }
  0x13   : > { %p1365_p9 = por %p1355_p6, %p55_p1  ;;  %p1022_p12 = scmp.lt.s32.totalorder %s1258_s8, 6 }
  0x14   : > { %s1370_s17 = scalar_select %p46_p7, %s1246_s28, %s48_s11  }
  0x15   : > { %p1372_p11 = por %p205_p10, %p61_p3  ;;  %s263_s19 = sand.u32 1, %s1246_s28  }
  0x16   : > { %s902_s20 = sshll.u32 %s263_s19, 6  ;;  %s969_s21 = sshll.u32 %s1254_s30, 6 }
  0x17   : > { %s273_s24 = scalar_lea.hbm %s1614_s0, %s969_s21  ;;  %s267_s25 = scalar_lea.vmem [#allocation3], %s902_s20 }
  0x18   : > { %s276_s4 = sshll.u32 %s267_s25, 4  ;;  %s274_s13 = sshll.u32 %s273_s24, 4  ;;  %s277_s4 = int_to_ptr.vmem [resolvable:$true] %s276_s4  ;;  %s275_s13 = int_to_ptr.hbm [resolvable:$true] %s274_s13 }
  0x19   : > { %p1015_p13 = pnand %p1022_p12, %p1349_p4  ;;  %p905_p0 = scmp.ge.s32.totalorder %s1258_s8, 1 }
  0x1a   : > { %s264_s9 = scalar_lea.sflag [#allocation4], %s263_s19  ;;  %s1260_s11 = smov 64  }
  0x1b   : > { %s1261_s10 = smov 4   ;;  %p294_p1 = scmp.lt.s32.totalorder %s1258_s8, 7 }
  0x1c   : > { %1017 = dma.hbm_to_vmem [thread:$0]  (!%p1015_p13), %s275_s13, 1024, %s277_s4, %s264_s9, %s1260_s11, %s1260_s11, %s1261_s10  }
  0x1d   : > { %p295_p2 = pnand %p905_p0, %p294_p1 }
  0x1e   : > { %s1387_s30 = sand.u32 (!%p295_p2), 1, %s1242_s27  }
  0x1f   : > { %298 = sbr.rel (%p295_p2) target bundleno = 293 (0x125), region = 44  ;;  %s906_s20 = sshll.u32 (!%p295_p2), %s1387_s30, 6 }
  0x20   : > { %s301_s21 = scalar_lea.sflag (!%p295_p2), [#allocation4], %s1387_s30  ;;  %s1391_s22 = scalar_lea.vmem (!%p295_p2), [#allocation3], %s906_s20 }
  0x24   : > { %1225 = dma.done.wait (%p1359_p8), %s301_s21, 1024  }
  0x25   : > { %1227 = vsyncadd (%p1359_p8), %s301_s21, 4294966272  ;;  %p342_p3 = scmp.lt.s32.totalorder %s1250_s29, 5  ;;  %s339_s25 = scalar_lea.vmem [#allocation6], %s1387_s30 }
  0x26   : > { %p908_p4 = scmp.ne.s32.totalorder %s1250_s29, 0 }
  0x27   : > { %s343_s10 = scalar_select %p342_p3, %s1250_s29, 5 }
  0x28   : > { %352 = sbr.rel (%p908_p4) target bundleno = 47 (0x2f), region = 52 }
  0x29   : > { %s907_s12 = sshll.u32 %s343_s10, 1 }
  0x2a   : > { %s1402_s24 = scalar_lea.vmem %s1619_s5, %s907_s12 }
  0x2d   : > { %v1262_v1 = vmov 0.0  }
  0x2e   : > { %353 = vst [vmem:[#allocation7] sm:$0x1] %v1262_v1 }
  0x2f PF: > { %v977_v2 = vld [vmem:[%s1391_s22 + $0x38] sm:$0xff]  ;;  %v1263_v3 = vmov 0   ;;  %v380_v5 = vld [vmem:[%s1616_s2 + $0x10] sm:$0xff]  ;;  %v379_v9 = vld [vmem:[%s1616_s2 + $0x8] sm:$0xff]  ;;  %s776_s10 = scalar_lea.hbm %s1620_s6, %s1250_s29  ;;  %s778_s12 = sshll.u32 %s339_s25, 4  ;;  %s779_s12 = int_to_ptr.vmem [resolvable:$true] %s778_s12 }
  0x30   : > { %1079 = vset.pattern.permute.xlu0 %v1263_v3  ;;  %v378_v4 = vld [vmem:[%s1616_s2] sm:$0xff]  ;;  %1080 = vset.pattern.permute.xlu1 %v1263_v3  ;;  %v976_v6 = vld [vmem:[%s1391_s22 + $0x30] sm:$0xff]  ;;  %v975_v7 = vld [vmem:[%s1391_s22 + $0x28] sm:$0xff]  ;;  %s780_s19 = sshll.u32 %s776_s10, 4  ;;  %s1264_s23 = smov [#allocation7]   ;;  %s781_s19 = int_to_ptr.hbm [resolvable:$true] %s780_s19 }
  0x31   : > { %498 = vmatpush.bf16.msra.mxu0 %v977_v2  ;;  %982 = vmatpush.bf16.msra.mxu1 %v977_v2  ;;  %v382_v8 = vld [vmem:[%s1616_s2 + $0x20] sm:$0xff]  ;;  %v381_v10 = vld [vmem:[%s1616_s2 + $0x18] sm:$0xff]  ;;  %v383_v12 = vld [vmem:[%s1616_s2 + $0x28] sm:$0xff]  ;;  %s791_s15 = sshll.u32 %s1264_s23, 4  ;;  %s793_s29 = sshll.u32 %s1621_s7, 4  ;;  %s792_s15 = int_to_ptr.vmem [resolvable:$true] %s791_s15  ;;  %s794_s29 = int_to_ptr.hbm [resolvable:$true] %s793_s29 }
  0x32   : > { %983 = vmatpush.bf16.msra.mxu2 %v977_v2  ;;  %984 = vmatpush.bf16.msra.mxu3 %v977_v2  ;;  %v974_v11 = vld [vmem:[%s1391_s22 + $0x20] sm:$0xff]  ;;  %v973_v13 = vld [vmem:[%s1391_s22 + $0x18] sm:$0xff]  ;;  %v384_v14 = vld [vmem:[%s1616_s2 + $0x30] sm:$0xff]  ;;  %s1158_s9 = sshra.s32 %s781_s19, 4  ;;  %s1159_s9 = int_to_ptr.hbm [resolvable:$true] %s1158_s9 }
  0x33   : > { %388 = vperm.xlu0 %1079, %v378_v4   ;;  %398 = vperm.xlu1 %1080, %v380_v5   ;;  %v385_v15 = vld [vmem:[%s1616_s2 + $0x38] sm:$0xff]  ;;  %v679_v17 = vld [vmem:[%s1617_s3] sm:$0xff]  ;;  %v971_v18 = vld [vmem:[%s1391_s22 + $0x8] sm:$0xff]  ;;  %s1160_s11 = scalar_lea.hbm %s1159_s9, 1  ;;  %p1165_p10 = scmp.lt.s32.totalorder %s1159_s9, %s1620_s6 }
  0x34   : > { %1081 = vset.pattern.permute.xlu2 %v1263_v3  ;;  %v972_v16 = vld [vmem:[%s1391_s22 + $0x10] sm:$0xff]  ;;  %v680_v19 = vld [vmem:[%s1617_s3 + $0x8] sm:$0xff]  ;;  %v978_v22 = vld [vmem:[%s1615_s1] sm:$0xff]  ;;  %p1161_p5 = scmp.ne.s32.totalorder %s1159_s9, %s1160_s11 }
  0x35   : > { %499 = vmatpush.bf16.msra.mxu0 %v976_v6  ;;  %985 = vmatpush.bf16.msra.mxu1 %v976_v6  ;;  %v681_v20 = vld [vmem:[%s1617_s3 + $0x10] sm:$0xff]  ;;  %v970_v21 = vld [vmem:[%s1391_s22] sm:$0xff]  ;;  %v682_v24 = vld [vmem:[%s1617_s3 + $0x18] sm:$0xff]  ;;  %s1164_s22 = scalar_lea.hbm %s1620_s6, 6 }
  0x36   : > { %986 = vmatpush.bf16.msra.mxu2 %v976_v6  ;;  %987 = vmatpush.bf16.msra.mxu3 %v976_v6  ;;  %v979_v23 = vld [vmem:[%s1615_s1 + $0x8] sm:$0xff]  ;;  %v980_v25 = vld [vmem:[%s1615_s1 + $0x10] sm:$0xff]  ;;  %v981_v26 = vld [vmem:[%s1615_s1 + $0x18] sm:$0xff]  ;;  %p1162_p7 = pnand %p1161_p5, %p1365_p9  ;;  %p1166_p12 = scmp.lt.s32.totalorder %s1164_s22, %s1160_s11 }
  0x37   : > { %408 = vperm.xlu2 %1081, %v382_v8   ;;  %v683_v27 = vld [vmem:[%s1617_s3 + $0x20] sm:$0xff]  ;;  %v684_v28 = vld [vmem:[%s1617_s3 + $0x28] sm:$0xff]  ;;  %v685_v29 = vld [vmem:[%s1617_s3 + $0x30] sm:$0xff] }
  0x38   : > { %v686_v30 = vld [vmem:[%s1617_s3 + $0x38] sm:$0xff]  ;;  %v748_v31 = vld [vmem:[#allocation2] sm:$0x1]  ;;  %p1163_p8 = pneg %p1162_p7  ;;  %p1167_p13 = por %p1166_p12, %p1165_p10 }
  0x39   : > { %500 = vmatpush.bf16.msra.mxu0 %v975_v7  ;;  %988 = vmatpush.bf16.msra.mxu1 %v975_v7 }
  0x3a   : > { %989 = vmatpush.bf16.msra.mxu2 %v975_v7  ;;  %990 = vmatpush.bf16.msra.mxu3 %v975_v7  ;;  %p1168_p0 = pnand %p1167_p13, %p1163_p8 }
  0x3b   : > { %393 = vperm.xlu0 %1079, %v379_v9   ;;  %403 = vperm.xlu1 %1080, %v381_v10  }
  0x3d   : > { %501 = vmatpush.bf16.msra.mxu0 %v974_v11  ;;  %991 = vmatpush.bf16.msra.mxu1 %v974_v11 }
  0x3e   : > { %992 = vmatpush.bf16.msra.mxu2 %v974_v11  ;;  %993 = vmatpush.bf16.msra.mxu3 %v974_v11 }
  0x3f   : > { %413 = vperm.xlu2 %1081, %v383_v12  }
  0x41   : > { %502 = vmatpush.bf16.msra.mxu0 %v973_v13  ;;  %994 = vmatpush.bf16.msra.mxu1 %v973_v13 }
  0x42   : > { %995 = vmatpush.bf16.msra.mxu2 %v973_v13  ;;  %996 = vmatpush.bf16.msra.mxu3 %v973_v13 }
  0x43   : > { %418 = vperm.xlu0 %1079, %v384_v14   ;;  %423 = vperm.xlu1 %1080, %v385_v15  }
  0x45   : > { %503 = vmatpush.bf16.msra.mxu0 %v972_v16  ;;  %997 = vmatpush.bf16.msra.mxu1 %v972_v16 }
  0x46   : > { %998 = vmatpush.bf16.msra.mxu2 %v972_v16  ;;  %999 = vmatpush.bf16.msra.mxu3 %v972_v16 }
  0x47   : > { %689 = vperm.xlu2 %1081, %v679_v17  }
  0x49   : > { %504 = vmatpush.bf16.msra.mxu0 %v971_v18  ;;  %1000 = vmatpush.bf16.msra.mxu1 %v971_v18 }
  0x4a   : > { %1001 = vmatpush.bf16.msra.mxu2 %v971_v18  ;;  %1002 = vmatpush.bf16.msra.mxu3 %v971_v18 }
  0x4b   : > { %694 = vperm.xlu0 %1079, %v680_v19   ;;  %699 = vperm.xlu1 %1080, %v681_v20  }
  0x4d   : > { %505 = vmatpush.bf16.msra.mxu0 %v970_v21  ;;  %1003 = vmatpush.bf16.msra.mxu1 %v970_v21 }
  0x4e   : > { %1004 = vmatpush.bf16.msra.mxu2 %v970_v21  ;;  %1005 = vmatpush.bf16.msra.mxu3 %v970_v21 }
  0x4f   : > { %704 = vperm.xlu2 %1081, %v682_v24  }
  0x50   : > { %506 = vmatmul.bf16.vlgmr.msra.gmra.mxu0 %v978_v22  ;;  %511 = vmatmul.bf16.vlgmr.msra.gmra.mxu1 %v979_v23 }
  0x51   : > { %516 = vmatmul.bf16.vlgmr.msra.gmra.mxu2 %v980_v25  ;;  %521 = vmatmul.bf16.vlgmr.msra.gmra.mxu3 %v981_v26 }
  0x53   : > { %709 = vperm.xlu0 %1079, %v683_v27   ;;  %714 = vperm.xlu1 %1080, %v684_v28  }
  0x57   : > { %719 = vperm.xlu2 %1081, %v685_v29  }
  0x5b   : > { %724 = vperm.xlu0 %1079, %v686_v30   ;;  %751 = vperm.xlu1 %1080, %v748_v31  }
  0x91   : > { %v409_v42 = vpop.permute.xlu2 %408 }
  0x99   : > { %v414_v7 = vpop.permute.xlu2 %413 }
  0xa5   : > { %v389_v32 = vpop.permute.xlu0 %388  ;;  %v399_v35 = vpop.permute.xlu1 %398 }
  0xad   : > { %v394_v33 = vpop.permute.xlu0 %393  ;;  %v404_v55 = vpop.permute.xlu1 %403 }
  0xb5   : > { %v419_v43 = vpop.permute.xlu0 %418 }
  0xcd   : > { %v507_v34 = vpop.f32.mrf.mxu0  ;;  %v512_v37 = vpop.f32.mrf.mxu1 }
  0xce   : > { %v1474_v36 = vadd.f32 %v507_v34, %v389_v32  ;;  %v1476_v38 = vadd.f32 %v512_v37, %v399_v35 }
  0xd0   : > { %v551_v39 = vand.u32 2147483647, %v1474_v36  ;;  %v553_v40 = vand.u32 2147483647, %v1476_v38  ;;  %v527_v26 = vmax.f32 %v1474_v36, 0.0  ;;  %vm535_vm0 = vcmp.ne.f32.partialorder %v1474_v36, %v1474_v36 }
  0xd1   : > { %v529_v31 = vmax.f32 %v1476_v38, 0.0  ;;  %vm537_vm2 = vcmp.ne.f32.partialorder %v1476_v38, %v1476_v38 }
  0xd2   : > { %v559_v41 = vsub.f32 0.0, %v551_v39  ;;  %v561_v44 = vsub.f32 0.0, %v553_v40 }
  0xd4   : > { %v567_v45 = vmul.f32 1.442695, %v559_v41  ;;  %v517_v46 = vpop.f32.mrf.mxu2  ;;  %v522_v47 = vpop.f32.mrf.mxu3  ;;  %v571_v48 = vmul.f32 1.442695, %v561_v44 }
  0xd5   : > { %v1480_v49 = vadd.f32 %v517_v46, %v409_v42  ;;  %v1482_v50 = vadd.f32 %v522_v47, %v419_v43  ;;  %v509_v51 = vpop.f32.mrf.mxu0  ;;  %v514_v53 = vpop.f32.mrf.mxu1 }
  0xd6   : > { %1082 = vpow2.f32 %v567_v45  ;;  %v1484_v52 = vadd.f32 %v509_v51, %v394_v33  ;;  %v1489_v59 = vadd.f32 %v514_v53, %v404_v55  ;;  %v424_v41 = vpop.permute.xlu1 %423 }
  0xd7   : > { %1084 = vpow2.f32 %v571_v48  ;;  %v555_v54 = vand.u32 2147483647, %v1480_v49  ;;  %v557_v56 = vand.u32 2147483647, %v1482_v50  ;;  %v531_v32 = vmax.f32 %v1480_v49, 0.0 }
  0xd8   : > { %v552_v58 = vand.u32 2147483647, %v1484_v52  ;;  %v554_v0 = vand.u32 2147483647, %v1489_v59  ;;  %v528_v55 = vmax.f32 %v1484_v52, 0.0  ;;  %vm536_vm4 = vcmp.ne.f32.partialorder %v1484_v52, %v1484_v52 }
  0xd9   : > { %v563_v57 = vsub.f32 0.0, %v555_v54  ;;  %v565_v60 = vsub.f32 0.0, %v557_v56  ;;  %vm538_vm8 = vcmp.ne.f32.partialorder %v1489_v59, %v1489_v59  ;;  %vm539_vm9 = vcmp.ne.f32.partialorder %v1480_v49, %v1480_v49 }
  0xda   : > { %v560_v62 = vsub.f32 0.0, %v552_v58  ;;  %v562_v8 = vsub.f32 0.0, %v554_v0  ;;  %vm541_vm12 = vcmp.ne.f32.partialorder %v1482_v50, %v1482_v50 }
  0xdb   : > { %v575_v61 = vmul.f32 1.442695, %v563_v57  ;;  %v579_v4 = vmul.f32 1.442695, %v565_v60 }
  0xdc   : > { %v1083_v63 = vpop.eup %1082  ;;  %v519_v5 = vpop.f32.mrf.mxu2  ;;  %v569_v6 = vmul.f32 1.442695, %v560_v62  ;;  %v573_v12 = vmul.f32 1.442695, %v562_v8 }
  0xdd   : > { %v1085_v1 = vpop.eup %1084  ;;  %v583_v2 = vadd.f32 1.0, %v1083_v63  ;;  %1086 = vpow2.f32 %v575_v61  ;;  %v586_v9 = vmul.f32 -0.5, %v1083_v63  ;;  %v1492_v10 = vadd.f32 %v519_v5, %v414_v7  ;;  %v524_v34 = vpop.f32.mrf.mxu3 }
  0xde   : > { %v601_v3 = vadd.f32 1.0, %v1085_v1  ;;  %v604_v11 = vmul.f32 -0.5, %v1085_v1  ;;  %v589_v19 = vand.u32 2147483647, %v1083_v63  ;;  %v607_v24 = vand.u32 2147483647, %v1085_v1 }
  0xdf   : > { %1088 = vlog2.f32 %v583_v2  ;;  %v556_v14 = vand.u32 2147483647, %v1492_v10  ;;  %v587_v17 = vadd.f32 1.0, %v586_v9  ;;  %v1517_v53 = vadd.f32 %v524_v34, %v424_v41 }
  0xe0   : > { %1090 = vlog2.f32 %v601_v3  ;;  %v605_v20 = vadd.f32 1.0, %v604_v11  ;;  %vm1502_vm1 = vcmp.lt.f32.partialorder %v589_v19, 0.0004427343  ;;  %vm1510_vm3 = vcmp.lt.f32.partialorder %v607_v24, 0.0004427343 }
  0xe1   : > { %1092 = vpow2.f32 %v569_v6  ;;  %v564_v21 = vsub.f32 0.0, %v556_v14  ;;  %v588_v30 = vmul.f32 %v1083_v63, %v587_v17  ;;  %v558_v3 = vand.u32 2147483647, %v1517_v53 }
  0xe2   : > { %1094 = vpow2.f32 %v579_v4  ;;  %v606_v39 = vmul.f32 %v1085_v1, %v605_v20  ;;  %v530_v1 = vmax.f32 %v1489_v59, 0.0  ;;  %vm540_vm13 = vcmp.ne.f32.partialorder %v1492_v10, %v1492_v10 }
  0xe3   : > { %v1087_v13 = vpop.eup %1086  ;;  %1096 = vpow2.f32 %v573_v12  ;;  %v577_v40 = vmul.f32 1.442695, %v564_v21  ;;  %v566_v11 = vsub.f32 0.0, %v558_v3  ;;  %vm542_vm15 = vcmp.ne.f32.partialorder %v1517_v53, %v1517_v53 }
  0xe4   : > { %v619_v15 = vadd.f32 1.0, %v1087_v13  ;;  %v622_v28 = vmul.f32 -0.5, %v1087_v13  ;;  %v625_v54 = vand.u32 2147483647, %v1087_v13 }
  0xe5   : > { %v1089_v16 = vpop.eup %1088  ;;  %v581_v21 = vmul.f32 1.442695, %v566_v11 }
  0xe6   : > { %v1091_v18 = vpop.eup %1090  ;;  %1098 = vlog2.f32 %v619_v15  ;;  %v585_v23 = vmul.f32 0.6931472, %v1089_v16  ;;  %v623_v48 = vadd.f32 1.0, %v622_v28  ;;  %vm1525_vm5 = vcmp.lt.f32.partialorder %v625_v54, 0.0004427343 }
  0xe7   : > { %v1093_v22 = vpop.eup %1092  ;;  %v603_v27 = vmul.f32 0.6931472, %v1091_v18 }
  0xe8   : > { %v1495_v25 = vpop.eup %1094  ;;  %v592_v29 = vadd.f32 1.0, %v1093_v22  ;;  %v595_v33 = vmul.f32 -0.5, %v1093_v22  ;;  %v591_v42 = vsel %vm1502_vm1, %v588_v30, %v585_v23  ;;  %v598_v60 = vand.u32 2147483647, %v1093_v22 }
  0xe9   : > { %v1097_v35 = vpop.eup %1096  ;;  %v637_v44 = vadd.f32 1.0, %v1495_v25  ;;  %v609_v47 = vsel %vm1510_vm3, %v606_v39, %v603_v27  ;;  %v655_v57 = vadd.f32 %v591_v42, %v527_v26  ;;  %v640_v62 = vmul.f32 -0.5, %v1495_v25 }
  0xea   : > { %1100 = vlog2.f32 %v592_v29  ;;  %v610_v45 = vadd.f32 1.0, %v1097_v35  ;;  %v613_v51 = vmul.f32 -0.5, %v1097_v35  ;;  %v596_v56 = vadd.f32 1.0, %v595_v33  ;;  %v695_v29 = vpop.permute.xlu0 %694 }
  0xeb   : > { %v657_v61 = vadd.f32 %v609_v47, %v529_v31  ;;  %v624_v0 = vmul.f32 %v1087_v13, %v623_v48  ;;  %v616_v7 = vand.u32 2147483647, %v1097_v35  ;;  %v663_v8 = vsel %vm535_vm0, %v1474_v36, %v655_v57  ;;  %v690_v13 = vpop.permute.xlu2 %689 }
  0xec   : > { %v1099_v46 = vpop.eup %1098  ;;  %1102 = vlog2.f32 %v610_v45  ;;  %v614_v2 = vadd.f32 1.0, %v613_v51  ;;  %v597_v6 = vmul.f32 %v1093_v22, %v596_v56  ;;  %vm599_vm6 = vcmp.lt.f32.partialorder %v598_v60, 0.0004427343 }
  0xed   : > { %v621_v58 = vmul.f32 0.6931472, %v1099_v46  ;;  %1104 = vpow2.f32 %v577_v40  ;;  %v665_v14 = vsel %vm537_vm2, %v1476_v38, %v657_v61  ;;  %v641_v15 = vadd.f32 1.0, %v640_v62 }
  0xee   : > { %1106 = vlog2.f32 %v637_v44  ;;  %v643_v16 = vand.u32 2147483647, %v1495_v25  ;;  %v615_v36 = vmul.f32 %v1097_v35, %v614_v2  ;;  %v957_v23 = vadd.f32 -0.6931472, %v663_v8 }
  0xef   : > { %v627_v9 = vsel %vm1525_vm5, %v624_v0, %v621_v58  ;;  %vm617_vm7 = vcmp.lt.f32.partialorder %v616_v7, 0.0004427343  ;;  %1108 = vpow2.f32 %v581_v21  ;;  %v959_v30 = vadd.f32 -0.6931472, %v665_v14 }
  0xf0   : > { %v1101_v63 = vpop.eup %1100  ;;  %v659_v24 = vadd.f32 %v627_v9, %v531_v32  ;;  %v727_v32 = vmul.f32 %v957_v23, %v690_v13  ;;  %v642_v40 = vmul.f32 %v1495_v25, %v641_v15  ;;  %vm644_vm10 = vcmp.lt.f32.partialorder %v643_v16, 0.0004427343 }
  0xf1   : > { %v594_v5 = vmul.f32 0.6931472, %v1101_v63  ;;  %v532_v61 = vmax.f32 %v1492_v10, 0.0  ;;  %v534_v16 = vmax.f32 %v1517_v53, 0.0 }
  0xf2   : > { %v1103_v12 = vpop.eup %1102  ;;  %v667_v39 = vsel %vm539_vm9, %v1480_v49, %v659_v24  ;;  %v710_v0 = vpop.permute.xlu0 %709 }
  0xf3   : > { %v600_v17 = vsel %vm599_vm6, %v597_v6, %v594_v5  ;;  %v1105_v18 = vpop.eup %1104  ;;  %v612_v20 = vmul.f32 0.6931472, %v1103_v12  ;;  %v705_v51 = vpop.permute.xlu2 %704  ;;  %v961_v54 = vadd.f32 -0.6931472, %v667_v39 }
  0xf4   : > { %v656_v19 = vadd.f32 %v600_v17, %v528_v55  ;;  %v1107_v22 = vpop.eup %1106  ;;  %v628_v26 = vadd.f32 1.0, %v1105_v18  ;;  %v631_v28 = vmul.f32 -0.5, %v1105_v18  ;;  %v634_v45 = vand.u32 2147483647, %v1105_v18 }
  0xf5   : > { %v618_v38 = vsel %vm617_vm7, %v615_v36, %v612_v20  ;;  %v639_v34 = vmul.f32 0.6931472, %v1107_v22  ;;  %v1109_v46 = vpop.eup %1108  ;;  %v533_v55 = vmax.f32 %v1482_v50, 0.0  ;;  %v731_v2 = vmul.f32 %v961_v54, %v710_v0 }
  0xf6   : > { %v664_v27 = vsel %vm536_vm4, %v1484_v52, %v656_v19  ;;  %v658_v33 = vadd.f32 %v618_v38, %v530_v1  ;;  %1110 = vlog2.f32 %v628_v26  ;;  %v700_v52 = vpop.permute.xlu1 %699  ;;  %v632_v42 = vadd.f32 1.0, %v631_v28 }
  0xf7   : > { %v958_v31 = vadd.f32 -0.6931472, %v664_v27  ;;  %v729_v43 = vmul.f32 %v959_v30, %v700_v52  ;;  %v645_v47 = vsel %vm644_vm10, %v642_v40, %v639_v34  ;;  %v649_v60 = vmul.f32 -0.5, %v1109_v46 }
  0xf8   : > { %v666_v37 = vsel %vm538_vm8, %v1489_v59, %v658_v33  ;;  %v646_v59 = vadd.f32 1.0, %v1109_v46  ;;  %v633_v49 = vmul.f32 %v1105_v18, %v632_v42  ;;  %v661_v25 = vadd.f32 %v645_v47, %v533_v55 }
  0xf9   : > { %v728_v35 = vmul.f32 %v958_v31, %v695_v29  ;;  %v960_v41 = vadd.f32 -0.6931472, %v666_v37  ;;  %vm635_vm11 = vcmp.lt.f32.partialorder %v634_v45, 0.0004427343  ;;  %v650_v3 = vadd.f32 1.0, %v649_v60 }
  0xfa   : > { %1112 = vlog2.f32 %v646_v59  ;;  %v669_v4 = vsel %vm541_vm12, %v1482_v50, %v661_v25  ;;  %v652_v6 = vand.u32 2147483647, %v1109_v46  ;;  %v725_v22 = vpop.permute.xlu0 %724  ;;  %v756_v31 = vld [vmem:[%s1402_s24] sm:$0x3]  ;;  %v759_v37 = vld [vmem:[#allocation7] sm:$0x1] }
  0xfb   : > { %v735_v44 = vadd.f32 %v728_v35, %v727_v32  ;;  %v730_v57 = vmul.f32 %v960_v41, %v705_v51  ;;  %v963_v12 = vadd.f32 -0.6931472, %v669_v4  ;;  %v651_v15 = vmul.f32 %v1109_v46, %v650_v3  ;;  %v720_v19 = vpop.permute.xlu2 %719  ;;  %s767_s24 = scalar_lea.sflag [#allocation5], %s1387_s30 }
  0xfc   : > { %v1111_v48 = vpop.eup %1110  ;;  %vm653_vm14 = vcmp.lt.f32.partialorder %v652_v6, 0.0004427343  ;;  %v761_v32 = vrot.slane %v756_v31, 1 }
  0xfd   : > { %v736_v56 = vadd.f32 %v735_v44, %v729_v43  ;;  %v630_v58 = vmul.f32 0.6931472, %v1111_v48  ;;  %v733_v50 = vmul.f32 %v963_v12, %v720_v19 }
  0xfe   : > { %v715_v11 = vpop.permute.xlu1 %714 }
  0xff   : > { %v737_v62 = vadd.f32 %v736_v56, %v730_v57  ;;  %v636_v63 = vsel %vm635_vm11, %v633_v49, %v630_v58 }
 0x100   : > { %v660_v1 = vadd.f32 %v636_v63, %v532_v61  ;;  %v1113_v9 = vpop.eup %1112 }
 0x101   : > { %v738_v8 = vadd.f32 %v737_v62, %v731_v2  ;;  %v648_v14 = vmul.f32 0.6931472, %v1113_v9 }
 0x102   : > { %v668_v5 = vsel %vm540_vm13, %v1492_v10, %v660_v1 }
 0x103   : > { %v962_v7 = vadd.f32 -0.6931472, %v668_v5  ;;  %v654_v18 = vsel %vm653_vm14, %v651_v15, %v648_v14 }
 0x104   : > { %v662_v20 = vadd.f32 %v654_v18, %v534_v16 }
 0x105   : > { %v732_v13 = vmul.f32 %v962_v7, %v715_v11 }
 0x106   : > { %v670_v10 = vsel %vm542_vm15, %v1517_v53, %v662_v20  ;;  %v752_v29 = vpop.permute.xlu1 %751 }
 0x107   : > { %v739_v17 = vadd.f32 %v738_v8, %v732_v13  ;;  %v964_v36 = vadd.f32 -0.6931472, %v670_v10  ;;  %v754_v53 = vperm.slane %v752_v29, 0 }
 0x109   : > { %v740_v21 = vadd.f32 %v739_v17, %v733_v50  ;;  %v734_v23 = vmul.f32 %v964_v36, %v725_v22 }
 0x10b   : > { %v741_v24 = vadd.f32 %v740_v21, %v734_v23 }
 0x10d   : > { %v742_v26 = vrot.slane %v741_v24, 4 }
 0x10f   : > { %v743_v27 = vadd.f32 %v742_v26, %v741_v24 }
 0x111   : > { %v744_v38 = vrot.slane %v743_v27, 2 }
 0x113   : > { %v745_v28 = vadd.f32 %v744_v38, %v743_v27 }
 0x115   : > { %v746_v30 = vrot.slane %v745_v28, 1 }
 0x117   : > { %v747_v33 = vadd.f32 %v746_v30, %v745_v28 }
 0x119   : > { %v755_v34 = vadd.f32 %v754_v53, %v747_v33 }
 0x11b   : > { %v757_v35 = vadd.f32 %v756_v31, %v755_v34 }
 0x11d   : > { %758 = vst [vmem:[%s339_s25] sm:$0x1] %v757_v35  ;;  %v763_v52 = vmul.f32 %v761_v32, %v757_v35 }
 0x11e   : > { %1171 = shalt.err (!%p1168_p0)
}
 0x11f   : > { %1008 = dma.vmem_to_hbm [thread:$0]  (%p1365_p9), %s779_s12, 16, %s781_s19, %s767_s24   ;;  %v764_v39 = vadd.f32 %v763_v52, %v759_v37 }
 0x121   : > { %765 = vst [vmem:[#allocation7] sm:$0x1] %v764_v39 }
 0x122   : > { %1010 = dma.vmem_to_hbm [thread:$0]  (%p1355_p6), %s792_s15, 16, %s794_s29, [#allocation8]  }
 0x123   : > { %1229 = dma.done.wait (%p1355_p6), [#allocation8], 16  }
 0x124   : > { %1231 = vsyncadd (%p1355_p6), [#allocation8], 4294967280 }
 0x125 PF: > { %p1025_p1 = scmp.ge.s32.totalorder %s1258_s8, 2  ;;  %s810_s30 = sand.u32 1, %s1238_s26  }
 0x126   : > { %s811_s16 = scalar_lea.sflag [#allocation5], %s810_s30 }
 0x127   : > { %p1019_p2 = pnand %p1025_p1, %p1372_p11 }
 0x129   : > { %p1020_p9 = pneg %p1019_p2 }
 0x12b   : > { %1233 = dma.done.wait (%p1020_p9), %s811_s16, 16  }
 0x12c   : > { %1235 = vsyncadd (%p1020_p9), %s811_s16, 4294967280  ;;  %s27_s8 = sadd.s32 1, %s1258_s8   ;;  %s1637_s29 = sld [smem:[#allocation12_spill]] }
 0x12d   : > { %p24_p3 = scmp.ge.s32.totalorder %s27_s8, 8   ;;  %s1638_s30 = sld [smem:[#allocation13_spill]] }
 0x12e   : > { %s1639_s26 = smov %s1242_s27  ;;  %s1640_s27 = smov %s1246_s28 }
 0x12f   : > { %s1641_s28 = smov %s1370_s17  ;;  %26 = sbr.rel (!%p24_p3) target bundleno = 10 (0xa), region = 105 }
 0x134   :  { %816 = vsyncpa [#allocation4], 1 }
 0x135   :  { %818 = vsyncpa [#allocation4 + $0x1], 1 }
 0x136   :  { %819 = vsyncpa [#allocation5], 1 }
 0x137   :  { %821 = vsyncpa [#allocation5 + $0x1], 1 }
 0x138   :  { %822 = vsyncpa [#allocation8], 1 }

</bundles_post_ra>
